<compile_context>
chip_gen: v5e
topology: v5e:2x2
jax: 0.10.0
libtpu: 0.0.40
codegen_flags: <defaults>
</compile_context>

<pallas_src>
import jax
import jax.numpy as jnp
from jax.experimental import pallas as pl
from jax.experimental.pallas import tpu as pltpu


# Per-block VMEM budget (bytes). in+out double-buffered ~= 4x this, plus the
# small (TM, 1) param columns -> ~9 MiB resident: safe on v5e's 16 MiB scoped
# default and comfortably inside v6e/v7x defaults. Tiles stay >= 512 wide.
_BLOCK_BYTES_BUDGET = 2 * 1024 * 1024


def _scale_kernel(mn_ref, sc_ref, x_ref, o_ref):
    mn = mn_ref[...]                       # (TM, 1)  compute dtype
    sc = sc_ref[...]                       # (TM, 1)  compute dtype
    x = x_ref[...].astype(mn.dtype)        # (TM, TN)
    o_ref[...] = (mn + sc * x).astype(o_ref.dtype)   # broadcast along lanes


def _pick_tiles(rows, cols, itemsize):
    """Pick (tm, tn): grow the lane dim first, keep blocks (8,128)-legal."""
    budget = _BLOCK_BYTES_BUDGET
    # Lane (contiguous) dim: full width if it fits with at least 8 sublanes.
    if cols * 8 * itemsize <= budget:
        tn = cols                                   # full extent -> always legal
    else:
        tn = max(128, (budget // (8 * itemsize) // 128) * 128)
    # Sublane dim with whatever budget remains.
    max_tm = budget // (tn * itemsize)
    if rows <= max_tm:
        tm = rows                                   # full extent -> always legal
    else:
        tm = max(8, (max_tm // 8) * 8)

    # Megacore (v7x has 2 TCs): make sure there are >= 2 parallel blocks when
    # the array allows it, so a single-block grid doesn't idle one core.
    if tm == rows and tn == cols:
        if rows >= 16:
            tm = ((pl.cdiv(rows, 2) + 7) // 8) * 8
        elif cols >= 256:
            tn = max(128, ((pl.cdiv(cols, 2) + 127) // 128) * 128)
    return tm, tn


@jax.jit
def scale_forward(x_nchw, ch_min, ch_max):
    """x_nchw: (N, C, H, W); ch_min, ch_max: (C,) — returns (N, C, H, W)."""
    N, C, H, W = x_nchw.shape
    rows, cols = N * C, H * W
    out_dtype = x_nchw.dtype
    itemsize = jnp.dtype(out_dtype).itemsize

    # bf16 inputs: do the affine in bf16 (more elems per VMEM byte); otherwise f32.
    compute_dtype = jnp.bfloat16 if out_dtype == jnp.bfloat16 else jnp.float32

    # Lane-dense 2-D slab; metadata-only under jit.
    x2d = x_nchw.reshape(rows, cols)

    # Per-row (n, c) affine params; (max - min) hoisted to the wrapper.
    mn_col = jnp.broadcast_to(ch_min.astype(compute_dtype)[None, :], (N, C)
                              ).reshape(rows, 1)
    sc_col = jnp.broadcast_to((ch_max - ch_min).astype(compute_dtype)[None, :],
                              (N, C)).reshape(rows, 1)

    tm, tn = _pick_tiles(rows, cols, itemsize)
    grid = (pl.cdiv(rows, tm), pl.cdiv(cols, tn))   # rows outer, cols inner:
    # param blocks are revisited (no re-DMA) across the inner column axis.

    param_bytes = 2 * rows * jnp.dtype(compute_dtype).itemsize
    cost = pl.CostEstimate(
        flops=2 * rows * cols,
        bytes_accessed=2 * rows * cols * itemsize + param_bytes,
        transcendentals=0,
    )

    out2d = pl.pallas_call(
        _scale_kernel,
        out_shape=jax.ShapeDtypeStruct((rows, cols), out_dtype),
        grid=grid,
        in_specs=[
            pl.BlockSpec((tm, 1), lambda i, j: (i, 0)),    # min column
            pl.BlockSpec((tm, 1), lambda i, j: (i, 0)),    # (max - min) column
            pl.BlockSpec((tm, tn), lambda i, j: (i, j)),   # input tile
        ],
        out_specs=pl.BlockSpec((tm, tn), lambda i, j: (i, j)),
        compiler_params=pltpu.CompilerParams(
            dimension_semantics=("parallel", "parallel"),
        ),
        cost_estimate=cost,
    )(mn_col, sc_col, x2d)

    return out2d.reshape(N, C, H, W)


if __name__ == "__main__":
    key = jax.random.PRNGKey(0)

    N, C, H, W = 2, 4, 16, 16
    x = jax.random.normal(key, (N, C, H, W), dtype=jnp.float32)

    # Deterministic buffer init (Scale.__init__ only declares shapes).
    ch_min = jnp.linspace(-1.0, 1.0, C, dtype=jnp.float32)
    ch_max = jnp.linspace(2.0, 5.0, C, dtype=jnp.float32)

    out = jax.block_until_ready(scale_forward(x, ch_min, ch_max))

    # Reference (plain JAX, mirrors the PyTorch broadcast semantics).
    ref = ch_min.reshape(1, C, 1, 1) + (
        (ch_max - ch_min).reshape(1, C, 1, 1) * x
    )

    assert out.shape == (N, C, H, W)
    assert out.dtype == x.dtype
    assert jnp.allclose(out, ref, atol=1e-6, rtol=1e-6)
    print("KERNEL_OK")
</pallas_src>

<mosaic_0001>
module attributes {stable_mosaic.version = 11 : i64} {
  func.func @_scale_kernel(%arg0: i32, %arg1: i32, %arg2: memref<8x1xf32, #tpu.memory_space<vmem>>, %arg3: memref<8x1xf32, #tpu.memory_space<vmem>>, %arg4: memref<8x128xf32, #tpu.memory_space<vmem>>, %arg5: memref<8x128xf32, #tpu.memory_space<vmem>>) attributes {dimension_semantics = [#tpu.dimension_semantics<parallel>, #tpu.dimension_semantics<parallel>], iteration_bounds = array<i64: 1, 2>, scalar_prefetch = 0 : i64, scratch_operands = 0 : i64, tpu.core_type = #tpu.core_type<tc>, window_params = [{transform_indices = @transform_0, window_bounds = array<i64: 8, 1>}, {transform_indices = @transform_1, window_bounds = array<i64: 8, 1>}, {transform_indices = @transform_2, window_bounds = array<i64: 8, 128>}, {transform_indices = @transform_3, window_bounds = array<i64: 8, 128>}]} {
    %c0 = arith.constant 0 : index
    %c0_0 = arith.constant 0 : index
    %0 = vector.load %arg2[%c0, %c0_0] : memref<8x1xf32, #tpu.memory_space<vmem>>, vector<8x1xf32>
    %c0_1 = arith.constant 0 : index
    %c0_2 = arith.constant 0 : index
    %1 = vector.load %arg3[%c0_1, %c0_2] : memref<8x1xf32, #tpu.memory_space<vmem>>, vector<8x1xf32>
    %c0_3 = arith.constant 0 : index
    %c0_4 = arith.constant 0 : index
    %2 = vector.load %arg4[%c0_3, %c0_4] : memref<8x128xf32, #tpu.memory_space<vmem>>, vector<8x128xf32>
    %3 = vector.broadcast %1 : vector<8x1xf32> to vector<8x128xf32>
    %4 = arith.mulf %3, %2 : vector<8x128xf32>
    %5 = vector.broadcast %0 : vector<8x1xf32> to vector<8x128xf32>
    %6 = arith.addf %5, %4 : vector<8x128xf32>
    %c0_5 = arith.constant 0 : index
    %c0_6 = arith.constant 0 : index
    %7 = vector.load %arg5[%c0_5, %c0_6] : memref<8x128xf32, #tpu.memory_space<vmem>>, vector<8x128xf32>
    tpu.vector_store %arg5[%c0_5, %c0_6], %6 {strides = array<i32>} : memref<8x128xf32, #tpu.memory_space<vmem>>, vector<8x128xf32>,
    return
  }
  func.func @transform_0(%arg0: i32, %arg1: i32) -> (i32, i32) {
    %c0_i32 = arith.constant 0 : i32
    %c0_i32_0 = arith.constant 0 : i32
    return %arg0, %c0_i32 : i32, i32
  }
  func.func @transform_1(%arg0: i32, %arg1: i32) -> (i32, i32) {
    %c0_i32 = arith.constant 0 : i32
    %c0_i32_0 = arith.constant 0 : i32
    return %arg0, %c0_i32 : i32, i32
  }
  func.func @transform_2(%arg0: i32, %arg1: i32) -> (i32, i32) {
    %c0_i32 = arith.constant 0 : i32
    return %arg0, %arg1 : i32, i32
  }
  func.func @transform_3(%arg0: i32, %arg1: i32) -> (i32, i32) {
    %c0_i32 = arith.constant 0 : i32
    return %arg0, %arg1 : i32, i32
  }
}

</mosaic_0001>

<bundles_post_ra>
// kernel: sub.1
= control target key start
LH: loop header
LB: loop body
LE: loop exit
PB: predicated region body
PF: predicated region fallthrough
CT: control target
= control target key end

     0   :  { %3 = vsyncpa [#allocation1], 0  ;;  %s50_s11 = smov [#allocation0]   ;;  %s75_s0 = inlined_call_operand.hbm [shape: f32[4], index: 0, kind: input, shape index: {}]   ;;  %s76_s1 = inlined_call_operand.vmem [shape: f32[4], index: 1, kind: input, shape index: {}]   ;;  %s77_s2 = inlined_call_operand.vmem [shape: f32[4], index: 2, kind: output, shape index: {}]  }
   0x1   :  { %s7_s0 = sshll.u32 %s75_s0, 4  ;;  %s9_s12 = sshll.u32 %s50_s11, 4  ;;  %s8_s0 = int_to_ptr.hbm [resolvable:$true] %s7_s0  ;;  %s10_s12 = int_to_ptr.vmem [resolvable:$true] %s9_s12 }
   0x2   :  { %12 = dma.hbm_to_vmem [thread:$0]  %s8_s0, 16, %s10_s12, [#allocation1]  }
   0x3   :  { %48 = dma.done.wait [#allocation1], 16  }
   0x4   :  { %49 = vsyncadd [#allocation1], 4294967280  ;;  %v15_v0 = vld [vmem:[#allocation0] sm:$0x1] }
   0x5   :  { %v16_v1 = vld [vmem:[%s76_s1] sm:$0x1] }
   0x6   :  { %v19_v2 = vsub.f32 %v15_v0, %v16_v1 }
   0x8   :  { %21 = vst [vmem:[%s77_s2] sm:$0x1] %v19_v2 }
   0x9   :  { %22 = vsyncpa [#allocation1], 1 }

// kernel: scale_forward.1
= control target key start
LH: loop header
LB: loop body
LE: loop exit
PB: predicated region body
PF: predicated region fallthrough
CT: control target
= control target key end

     0   :  { %s448_s12 = smov 0   ;;  %s450_s13 = smov 0   ;;  %s480_s0 = inlined_call_operand.vmem [shape: f32[8,1], index: 0, kind: input, shape index: {}]   ;;  %s481_s1 = inlined_call_operand.vmem [shape: f32[8,1], index: 1, kind: input, shape index: {}]   ;;  %s482_s2 = inlined_call_operand.vmem [shape: f32[8,256], index: 2, kind: input, shape index: {}]   ;;  %s483_s3 = inlined_call_operand.vmem [shape: f32[8,256], index: 3, kind: output, shape index: {}]  }
   0x1   :  { %s452_s14 = smov 0  }
   0x2 LB: > { %s22_s15 = sadd.s32 1, %s421_s13  ;;  %p372_p0 = scmp.ge.s32.totalorder %s425_s14, 1  ;;  %s425_s14 = sphi %s452_s14, %s13_s14   ;;  %s421_s13 = sphi %s450_s13, %s485_s13   ;;  %s417_s12 = sphi %s448_s12, %s484_s12  }
   0x3   : > { %p23_p1 = scmp.ge.s32.totalorder %s22_s15, 2  ;;  %p174_p2 = scmp.lt.s32.totalorder %s425_s14, 3 }
   0x5   : > { %s487_s15 = smov (%p23_p1, %s22_s15), 0  ;;  %p175_p3 = pnand %p372_p0, %p174_p2 }
   0x6   : > { %p222_p4 = scmp.lt.s32.totalorder (!%p175_p3), %s417_s12, 1 }
   0x7   : > { %178 = sbr.rel (%p175_p3) target bundleno = 140 (0x8c), region = 32 }
   0xc   : > { %v237_v0 = vld [vmem:[%s481_s1] sm:$0xff]  ;;  %v427_v1 = vmov 0   ;;  %s489_s12 = smov (!%p222_p4, %s417_s12), 1 }
   0xd   : > { %402 = vset.pattern.permute.xlu0 %v427_v1  ;;  %v236_v2 = vld [vmem:[%s480_s0] sm:$0xff]  ;;  %s373_s20 = sshll.u32 %s489_s12, 3 }
   0xe   : > { %241 = vperm.xlu0 %402, %v237_v0   ;;  %s227_s23 = scalar_lea.vmem %s482_s2, %s373_s20  ;;  %s235_s26 = scalar_lea.vmem %s483_s3, %s373_s20 }
   0xf   : > { %v238_v4 = vld [vmem:[%s227_s23] sm:$0xff] }
  0x16   : > { %247 = vperm.xlu0 %402, %v236_v2  }
  0x80   : > { %v242_v3 = vpop.permute.xlu0 %241 }
  0x81   : > { %v244_v5 = vmul.f32 %v242_v3, %v238_v4 }
  0x88   : > { %v248_v6 = vpop.permute.xlu0 %247 }
  0x89   : > { %v250_v7 = vadd.f32 %v248_v6, %v244_v5 }
  0x8b   : > { %251 = vst [vmem:[%s235_s26] sm:$0xff] %v250_v7 }
  0x8c PF: > { %s13_s14 = sadd.s32 1, %s425_s14   ;;  %s484_s12 = smov %s421_s13 }
  0x8d   : > { %p10_p5 = scmp.ge.s32.totalorder %s13_s14, 4   ;;  %s485_s13 = smov %s487_s15 }
  0x8f   :  { %12 = sbr.rel (!%p10_p5) target bundleno = 2 (0x2), region = 68 }

</bundles_post_ra>
